<compile_context>
chip_gen: v6e
topology: v6e:2x2x1
jax: 0.10.0
libtpu: 0.0.40
codegen_flags: <defaults>
</compile_context>

<pallas_src>
import functools

import jax
import jax.numpy as jnp
from jax.experimental import pallas as pl
from jax.experimental.pallas import tpu as pltpu

_LANES = 128
_SUBLANES = 8
_TARGET_BLOCK_BYTES = 4 << 20  # ~4 MiB per input block (double-buffered by Pallas)


def _softargmax_kernel(x_ref, o_ref, *, beta, eps, num_channels):
    """x_ref: (C, rows_tile, 128) logits tile; o_ref: (rows_tile, 128) soft-argmax tile."""
    # Pass 1: channel-wise max (pure VPU maxes over dense lane/sublane tiles).
    m = x_ref[0].astype(jnp.float32)
    for c in range(1, num_channels):
        m = jnp.maximum(m, x_ref[c].astype(jnp.float32))

    # Pass 2: exp + weighted / plain sums, channel index folded in as a scalar constant.
    den = jnp.exp((x_ref[0].astype(jnp.float32) - m) * beta)   # c == 0 contributes 0 to num
    num = jnp.zeros_like(den)
    for c in range(1, num_channels):
        e = jnp.exp((x_ref[c].astype(jnp.float32) - m) * beta)
        den = den + e
        num = num + e * float(c)

    o_ref[...] = (num * pl.reciprocal(den + eps, approx=False)).astype(o_ref.dtype)


def _pick_tiling(num_channels, hw, elem_bytes, batch):
    """Choose (rows_tile, rows_padded) for the (B, C, rows, 128) layout.

    rows_tile is either the full (possibly padded) row extent, or a multiple of 8 that
    fits the ~_TARGET_BLOCK_BYTES input-block budget at the HBM dtype.
    """
    rows = -(-hw // _LANES)  # ceil(hw / 128)
    budget_rows = _TARGET_BLOCK_BYTES // (num_channels * _LANES * elem_bytes)
    budget_rows = max(_SUBLANES, (budget_rows // _SUBLANES) * _SUBLANES)

    if rows <= budget_rows:
        rows_tile = rows  # full extent -> no 8-divisibility requirement
        # v7x megacore: prefer >= 2 grid steps so both TensorCores stream HBM.
        if batch < 2 and rows >= 2 * _SUBLANES:
            rows_tile = max(_SUBLANES, ((rows // 2) // _SUBLANES) * _SUBLANES)
    else:
        rows_tile = budget_rows

    rows_padded = ((rows + rows_tile - 1) // rows_tile) * rows_tile
    return rows_tile, rows_padded


@functools.partial(jax.jit, static_argnames=("beta", "dim", "epsilon"))
def soft_arg_max(x, beta=500.0, dim=1, epsilon=1e-12):
    """JAX/Pallas equivalent of SoftArgMax.forward for NCHW input. Returns (B, 1, H, W) f32."""
    if dim != 1:
        raise NotImplementedError("SoftArgMax kernel implements dim=1 (channel) only.")
    b, c, h, w = x.shape
    hw = h * w
    elem_bytes = jnp.dtype(x.dtype).itemsize

    rows_tile, rows_padded = _pick_tiling(c, hw, elem_bytes, b)
    hw_padded = rows_padded * _LANES

    x3 = x.reshape(b, c, hw)
    if hw_padded != hw:
        # One-time pad so every block is exact: unmasked full-lane loads/stores everywhere.
        x3 = jnp.pad(x3, ((0, 0), (0, 0), (0, hw_padded - hw)))
    x4 = x3.reshape(b, c, rows_padded, _LANES)  # free reshape; spatial -> (sublane, lane)

    grid = (b, rows_padded // rows_tile)

    # Explicit, padding-aware VMEM budget: double-buffered input + output blocks,
    # plus in-kernel f32 intermediates and headroom.  Stays well under the v7x 64 MiB
    # physical / 32 MiB default-scoped VMEM while lifting v5e's 16 MiB default.
    in_block_bytes = c * rows_tile * _LANES * elem_bytes
    out_block_bytes = rows_tile * _LANES * 4
    vmem_limit = 2 * (in_block_bytes + out_block_bytes) + 6 * out_block_bytes + (4 << 20)

    kernel = functools.partial(
        _softargmax_kernel, beta=float(beta), eps=float(epsilon), num_channels=c
    )
    out = pl.pallas_call(
        kernel,
        out_shape=jax.ShapeDtypeStruct((b, rows_padded, _LANES), jnp.float32),
        grid_spec=pltpu.PrefetchScalarGridSpec(
            num_scalar_prefetch=0,
            grid=grid,
            in_specs=[pl.BlockSpec((None, c, rows_tile, _LANES), lambda bi, si: (bi, 0, si, 0))],
            out_specs=pl.BlockSpec((None, rows_tile, _LANES), lambda bi, si: (bi, si, 0)),
        ),
        compiler_params=pltpu.CompilerParams(
            dimension_semantics=("parallel", "parallel"),
            vmem_limit_bytes=int(vmem_limit),
        ),
    )(x4)

    out = out.reshape(b, hw_padded)
    if hw_padded != hw:
        out = out[:, :hw]
    return out.reshape(b, 1, h, w)


def _reference(x, beta=500.0, epsilon=1e-12):
    xf = x.astype(jnp.float32)
    a_max = jnp.max(xf, axis=1, keepdims=True)
    a_exp = jnp.exp((xf - a_max) * beta)
    a_sm = a_exp / (jnp.sum(a_exp, axis=1, keepdims=True) + epsilon)
    idx = jnp.arange(x.shape[1], dtype=jnp.float32).reshape(1, -1, 1, 1)
    return jnp.sum(a_sm * idx, axis=1, keepdims=True)


if __name__ == "__main__":
    key = jax.random.PRNGKey(0)
    B, C, H, W = 2, 4, 16, 16
    x = jax.random.normal(key, (B, C, H, W), dtype=jnp.float32)

    out = soft_arg_max(x)
    jax.block_until_ready(out)

    ref = _reference(x)
    assert out.shape == (B, 1, H, W), out.shape
    assert jnp.allclose(out, ref, atol=1e-4, rtol=1e-4), float(jnp.max(jnp.abs(out - ref)))

    print("KERNEL_OK")
</pallas_src>

<mosaic_0001>
module attributes {stable_mosaic.version = 11 : i64} {
  func.func @_softargmax_kernel(%arg0: i32, %arg1: i32, %arg2: memref<1x4x2x128xf32, #tpu.memory_space<vmem>>, %arg3: memref<1x2x128xf32, #tpu.memory_space<vmem>>) attributes {dimension_semantics = [#tpu.dimension_semantics<parallel>, #tpu.dimension_semantics<parallel>], iteration_bounds = array<i64: 2, 1>, scalar_prefetch = 0 : i64, scratch_operands = 0 : i64, tpu.core_type = #tpu.core_type<tc>, window_params = [{transform_indices = @transform_0, window_bounds = array<i64: 1, 4, 2, 128>}, {transform_indices = @transform_1, window_bounds = array<i64: 1, 2, 128>}]} {
    %c0 = arith.constant 0 : index
    %c0_0 = arith.constant 0 : index
    %c0_1 = arith.constant 0 : index
    %c0_2 = arith.constant 0 : index
    %0 = vector.load %arg2[%c0, %c0_0, %c0_1, %c0_2] : memref<1x4x2x128xf32, #tpu.memory_space<vmem>>, vector<1x1x2x128xf32>
    %1 = vector.shape_cast %0 : vector<1x1x2x128xf32> to vector<2x128xf32>
    %c0_3 = arith.constant 0 : index
    %c1 = arith.constant 1 : index
    %c0_4 = arith.constant 0 : index
    %c0_5 = arith.constant 0 : index
    %2 = vector.load %arg2[%c0_3, %c1, %c0_4, %c0_5] : memref<1x4x2x128xf32, #tpu.memory_space<vmem>>, vector<1x1x2x128xf32>
    %3 = vector.shape_cast %2 : vector<1x1x2x128xf32> to vector<2x128xf32>
    %4 = arith.maximumf %1, %3 : vector<2x128xf32>
    %c0_6 = arith.constant 0 : index
    %c2 = arith.constant 2 : index
    %c0_7 = arith.constant 0 : index
    %c0_8 = arith.constant 0 : index
    %5 = vector.load %arg2[%c0_6, %c2, %c0_7, %c0_8] : memref<1x4x2x128xf32, #tpu.memory_space<vmem>>, vector<1x1x2x128xf32>
    %6 = vector.shape_cast %5 : vector<1x1x2x128xf32> to vector<2x128xf32>
    %7 = arith.maximumf %4, %6 : vector<2x128xf32>
    %c0_9 = arith.constant 0 : index
    %c3 = arith.constant 3 : index
    %c0_10 = arith.constant 0 : index
    %c0_11 = arith.constant 0 : index
    %8 = vector.load %arg2[%c0_9, %c3, %c0_10, %c0_11] : memref<1x4x2x128xf32, #tpu.memory_space<vmem>>, vector<1x1x2x128xf32>
    %9 = vector.shape_cast %8 : vector<1x1x2x128xf32> to vector<2x128xf32>
    %10 = arith.maximumf %7, %9 : vector<2x128xf32>
    %c0_12 = arith.constant 0 : index
    %c0_13 = arith.constant 0 : index
    %c0_14 = arith.constant 0 : index
    %c0_15 = arith.constant 0 : index
    %11 = vector.load %arg2[%c0_12, %c0_13, %c0_14, %c0_15] : memref<1x4x2x128xf32, #tpu.memory_space<vmem>>, vector<1x1x2x128xf32>
    %12 = vector.shape_cast %11 : vector<1x1x2x128xf32> to vector<2x128xf32>
    %13 = arith.subf %12, %10 : vector<2x128xf32>
    %cst = arith.constant 5.000000e+02 : f32
    %14 = vector.broadcast %cst : f32 to vector<2x128xf32>
    %15 = arith.mulf %13, %14 : vector<2x128xf32>
    %16 = math.exp %15 : vector<2x128xf32>
    %cst_16 = arith.constant 0.000000e+00 : f32
    %17 = vector.broadcast %cst_16 : f32 to vector<2x128xf32>
    %c0_17 = arith.constant 0 : index
    %c1_18 = arith.constant 1 : index
    %c0_19 = arith.constant 0 : index
    %c0_20 = arith.constant 0 : index
    %18 = vector.load %arg2[%c0_17, %c1_18, %c0_19, %c0_20] : memref<1x4x2x128xf32, #tpu.memory_space<vmem>>, vector<1x1x2x128xf32>
    %19 = vector.shape_cast %18 : vector<1x1x2x128xf32> to vector<2x128xf32>
    %20 = arith.subf %19, %10 : vector<2x128xf32>
    %cst_21 = arith.constant 5.000000e+02 : f32
    %21 = vector.broadcast %cst_21 : f32 to vector<2x128xf32>
    %22 = arith.mulf %20, %21 : vector<2x128xf32>
    %23 = math.exp %22 : vector<2x128xf32>
    %24 = arith.addf %16, %23 : vector<2x128xf32>
    %cst_22 = arith.constant 1.000000e+00 : f32
    %25 = vector.broadcast %cst_22 : f32 to vector<2x128xf32>
    %26 = arith.mulf %23, %25 : vector<2x128xf32>
    %27 = arith.addf %17, %26 : vector<2x128xf32>
    %c0_23 = arith.constant 0 : index
    %c2_24 = arith.constant 2 : index
    %c0_25 = arith.constant 0 : index
    %c0_26 = arith.constant 0 : index
    %28 = vector.load %arg2[%c0_23, %c2_24, %c0_25, %c0_26] : memref<1x4x2x128xf32, #tpu.memory_space<vmem>>, vector<1x1x2x128xf32>
    %29 = vector.shape_cast %28 : vector<1x1x2x128xf32> to vector<2x128xf32>
    %30 = arith.subf %29, %10 : vector<2x128xf32>
    %cst_27 = arith.constant 5.000000e+02 : f32
    %31 = vector.broadcast %cst_27 : f32 to vector<2x128xf32>
    %32 = arith.mulf %30, %31 : vector<2x128xf32>
    %33 = math.exp %32 : vector<2x128xf32>
    %34 = arith.addf %24, %33 : vector<2x128xf32>
    %cst_28 = arith.constant 2.000000e+00 : f32
    %35 = vector.broadcast %cst_28 : f32 to vector<2x128xf32>
    %36 = arith.mulf %33, %35 : vector<2x128xf32>
    %37 = arith.addf %27, %36 : vector<2x128xf32>
    %c0_29 = arith.constant 0 : index
    %c3_30 = arith.constant 3 : index
    %c0_31 = arith.constant 0 : index
    %c0_32 = arith.constant 0 : index
    %38 = vector.load %arg2[%c0_29, %c3_30, %c0_31, %c0_32] : memref<1x4x2x128xf32, #tpu.memory_space<vmem>>, vector<1x1x2x128xf32>
    %39 = vector.shape_cast %38 : vector<1x1x2x128xf32> to vector<2x128xf32>
    %40 = arith.subf %39, %10 : vector<2x128xf32>
    %cst_33 = arith.constant 5.000000e+02 : f32
    %41 = vector.broadcast %cst_33 : f32 to vector<2x128xf32>
    %42 = arith.mulf %40, %41 : vector<2x128xf32>
    %43 = math.exp %42 : vector<2x128xf32>
    %44 = arith.addf %34, %43 : vector<2x128xf32>
    %cst_34 = arith.constant 3.000000e+00 : f32
    %45 = vector.broadcast %cst_34 : f32 to vector<2x128xf32>
    %46 = arith.mulf %43, %45 : vector<2x128xf32>
    %47 = arith.addf %37, %46 : vector<2x128xf32>
    %cst_35 = arith.constant 9.99999996E-13 : f32
    %48 = vector.broadcast %cst_35 : f32 to vector<2x128xf32>
    %49 = arith.addf %44, %48 : vector<2x128xf32>
    %50 = tpu.reciprocal %49 : vector<2x128xf32> -> vector<2x128xf32>
    %51 = arith.mulf %47, %50 : vector<2x128xf32>
    %c0_36 = arith.constant 0 : index
    %c0_37 = arith.constant 0 : index
    %c0_38 = arith.constant 0 : index
    %52 = vector.load %arg3[%c0_36, %c0_37, %c0_38] : memref<1x2x128xf32, #tpu.memory_space<vmem>>, vector<1x2x128xf32>
    %53 = vector.shape_cast %52 : vector<1x2x128xf32> to vector<2x128xf32>
    %54 = vector.shape_cast %51 : vector<2x128xf32> to vector<1x2x128xf32>
    tpu.vector_store %arg3[%c0_36, %c0_37, %c0_38], %54 {strides = array<i32>} : memref<1x2x128xf32, #tpu.memory_space<vmem>>, vector<1x2x128xf32>,
    return
  }
  func.func @transform_0(%arg0: i32, %arg1: i32) -> (i32, i32, i32, i32) {
    %c0_i32 = arith.constant 0 : i32
    %c0_i32_0 = arith.constant 0 : i32
    %c0_i32_1 = arith.constant 0 : i32
    return %arg0, %c0_i32, %arg1, %c0_i32_0 : i32, i32, i32, i32
  }
  func.func @transform_1(%arg0: i32, %arg1: i32) -> (i32, i32, i32) {
    %c0_i32 = arith.constant 0 : i32
    %c0_i32_0 = arith.constant 0 : i32
    return %arg0, %arg1, %c0_i32 : i32, i32, i32
  }
}

</mosaic_0001>

<bundles_post_ra>
// kernel: soft_arg_max.1
= control target key start
LH: loop header
LB: loop body
LE: loop exit
PB: predicated region body
PF: predicated region fallthrough
CT: control target
= control target key end

     0   :  { %s343_s6 = smov 0   ;;  %s345_s7 = smov 0   ;;  %s380_s0 = inlined_call_operand.vmem [shape: f32[2,4,2,128], index: 0, kind: input, shape index: {}]   ;;  %s381_s1 = inlined_call_operand.vmem [shape: f32[2,2,128], index: 1, kind: output, shape index: {}]  }
   0x1   :  { %s347_s8 = smov 0  }
   0x2 LB: > { %s23_s9 = sadd.s32 1, %s327_s7  ;;  %p265_p0 = scmp.ge.s32.totalorder %s331_s8, 1  ;;  %s331_s8 = sphi %s347_s8, %s11_s8   ;;  %s327_s7 = sphi %s345_s7, %s383_s7   ;;  %s323_s6 = sphi %s343_s6, %s382_s6  }
   0x3   : > { %p25_p1 = scmp.ge.s32.totalorder %s23_s9, 2  ;;  %p106_p2 = scmp.lt.s32.totalorder %s331_s8, 3 }
   0x5   : > { %s385_s9 = smov (%p25_p1, %s23_s9), 0  ;;  %p107_p3 = pnand %p265_p0, %p106_p2 }
   0x6   : > { %p131_p4 = scmp.lt.s32.totalorder (!%p107_p3), %s323_s6, 1 }
   0x7   : > { %110 = sbr.rel (%p107_p3) target bundleno = 68 (0x44), region = 24 }
   0xc   : > { %s387_s6 = smov (!%p131_p4, %s323_s6), 1 }
   0xd   : > { %s274_s10 = sshll.u32 %s387_s6, 3  ;;  %s268_s14 = sshll.u32 %s387_s6, 1 }
   0xe   : > { %s138_s13 = scalar_lea.vmem %s380_s0, %s274_s10  ;;  %s145_s17 = scalar_lea.vmem %s381_s1, %s268_s14 }
   0xf   : > { %v146_v0 = vld [vmem:[%s138_s13] sm:$0x3]  ;;  %v269_v1 = vld [vmem:[%s138_s13 + $0x2] sm:$0x3]  ;;  %v270_v2 = vld [vmem:[%s138_s13 + $0x4] sm:$0x3] }
  0x10   : > { %v149_v3 = vmax.f32 %v146_v0, %v269_v1  ;;  %v271_v4 = vld [vmem:[%s138_s13 + $0x6] sm:$0x3] }
  0x12   : > { %v152_v5 = vmax.f32 %v149_v3, %v270_v2 }
  0x14   : > { %v155_v6 = vmax.f32 %v152_v5, %v271_v4 }
  0x16   : > { %v156_v7 = vsub.f32 %v146_v0, %v155_v6  ;;  %v160_v8 = vsub.f32 %v269_v1, %v155_v6  ;;  %v166_v9 = vsub.f32 %v270_v2, %v155_v6  ;;  %v173_v10 = vsub.f32 %v271_v4, %v155_v6 }
  0x18   : > { %v157_v11 = vmul.f32 500.0, %v156_v7  ;;  %v161_v12 = vmul.f32 500.0, %v160_v8  ;;  %v167_v13 = vmul.f32 500.0, %v166_v9  ;;  %v174_v14 = vmul.f32 500.0, %v173_v10 }
  0x1a   : > { %v158_v15 = vmul.f32 1.442695, %v157_v11  ;;  %v162_v16 = vmul.f32 1.442695, %v161_v12  ;;  %v168_v17 = vmul.f32 1.442695, %v167_v13 }
  0x1b   : > { %v175_v18 = vmul.f32 1.442695, %v174_v14 }
  0x1c   : > { %299 = vpow2.f32 %v158_v15 }
  0x1d   : > { %301 = vpow2.f32 %v162_v16 }
  0x1e   : > { %303 = vpow2.f32 %v168_v17 }
  0x1f   : > { %305 = vpow2.f32 %v175_v18 }
  0x29   : > { %v300_v19 = vpop.eup %299 }
  0x2a   : > { %v302_v20 = vpop.eup %301 }
  0x2b   : > { %v304_v21 = vpop.eup %303  ;;  %v164_v22 = vadd.f32 %v302_v20, %v300_v19 }
  0x2c   : > { %v306_v23 = vpop.eup %305  ;;  %v171_v27 = vmul.f32 2.0, %v304_v21 }
  0x2d   : > { %v170_v24 = vadd.f32 %v304_v21, %v164_v22  ;;  %v178_v29 = vmul.f32 3.0, %v306_v23 }
  0x2e   : > { %v172_v28 = vadd.f32 %v302_v20, %v171_v27 }
  0x2f   : > { %v177_v25 = vadd.f32 %v306_v23, %v170_v24 }
  0x30   : > { %v179_v30 = vadd.f32 %v178_v29, %v172_v28 }
  0x31   : > { %v180_v26 = vadd.f32 1e-12, %v177_v25 }
  0x33   : > { %307 = vrcp.f32 %v180_v26 }
  0x40   : > { %v308_v31 = vpop.eup %307 }
  0x41   : > { %v182_v32 = vmul.f32 %v308_v31, %v179_v30 }
  0x43   : > { %183 = vst [vmem:[%s145_s17] sm:$0x3] %v182_v32 }
  0x44 PF: > { %s11_s8 = sadd.s32 1, %s331_s8   ;;  %s382_s6 = smov %s327_s7 }
  0x45   : > { %p8_p5 = scmp.ge.s32.totalorder %s11_s8, 4   ;;  %s383_s7 = smov %s385_s9 }
  0x47   :  { %10 = sbr.rel (!%p8_p5) target bundleno = 2 (0x2), region = 57 }

</bundles_post_ra>
